<compile_context>
chip_gen: v5e
topology: v5e:2x2
jax: 0.10.0
libtpu: 0.0.40
codegen_flags: <defaults>
</compile_context>

<pallas_src>
import jax
import jax.numpy as jnp
from jax.experimental import pallas as pl
from jax.experimental.pallas import tpu as pltpu


def _fusion_kernel(x_ref, y_ref, w1_ref, b1_ref, w2_ref, b2_ref, out_ref):
    # x_ref / y_ref / out_ref : (Bt, C, HW)
    # w1_ref : (C, Crp)   transposed conv1 weight, pre-scaled by 1/HW
    # b1_ref : (1, Crp)
    # w2_ref : (Crp, C)   transposed conv2 weight
    # b2_ref : (1, C)
    x = x_ref[...]
    y = y_ref[...]

    # Global average pool as two lane-reduced sums (z = x + y is never
    # materialized); the 1/HW is folded into w1 at trace time.
    pooled = jnp.sum(x, axis=2) + jnp.sum(y, axis=2)              # (Bt, C)

    # conv1x1 #1 + ReLU  (straight matvec, weights pre-transposed).
    h = jnp.dot(pooled, w1_ref[...], preferred_element_type=jnp.float32)
    h = jnp.maximum(h + b1_ref[...], 0.0)                         # (Bt, Crp)

    # conv1x1 #2 + sigmoid.
    logits = jnp.dot(h, w2_ref[...], preferred_element_type=jnp.float32)
    s = jax.nn.sigmoid(logits + b2_ref[...])                      # (Bt, C)

    # Gated blend: out = y + (x - y) * s   (s broadcast over the lane axis).
    out_ref[...] = y + (x - y) * s[:, :, None]


def _round_up(n, m):
    return (n + m - 1) // m * m


def _tpu_budget_info():
    """(vmem_capacity_bytes, two_tensorcores_per_chip)."""
    vmem_cap = 128 << 20                    # v5e / v6e physical VMEM
    two_tc = False
    try:
        vmem_cap = int(pltpu.get_tpu_info().vmem_capacity_bytes)
    except Exception:
        pass
    try:
        kind = jax.devices()[0].device_kind.lower()
        two_tc = "v7" in kind               # v7x: 2 TensorCores / chip
    except Exception:
        pass
    return vmem_cap, two_tc


def _pick_batch_block(B, per_batch_bytes, vmem_budget, target_bytes, two_tc):
    """Largest divisor of B such that:
      * ~7 resident blocks (3 operands x 2 pipeline buffers + 1 temp) fit the
        per-generation VMEM budget,
      * each per-operand block is ~target_bytes of HBM traffic,
      * on 2-TC chips (v7x) there are >= 2 grid steps (preferably an even
        count) so the 'parallel' grid axis shards across both TensorCores."""
    if B <= 1:
        return 1
    bt_vmem = max(1, vmem_budget // (7 * max(per_batch_bytes, 1)))
    bt_tgt = max(1, target_bytes // max(per_batch_bytes, 1))
    cap = B // 2 if two_tc else B
    bt = max(1, min(bt_vmem, bt_tgt, cap, B))
    divs = [d for d in range(1, bt + 1) if B % d == 0]
    if two_tc:
        even = [d for d in divs if (B // d) % 2 == 0]
        if even:
            return even[-1]
    return divs[-1]


def feature_fusion(x, y, w1, b1, w2, b2):
    """x, y: (B, C, H, W) f32. w1: (Cr, C), b1: (Cr,), w2: (C, Cr), b2: (C,)."""
    B, C, H, W = x.shape
    HW = H * W
    Cr = w1.shape[0]

    # Lane-dense spatial axis, NO padding: the last BlockSpec dim equals the
    # full HW, which the (8,128) rule allows; the tail vreg per row is simply
    # a masked store.  This keeps the kernel at 3 HBM passes total.
    x2 = x.reshape(B, C, HW)
    y2 = y.reshape(B, C, HW)

    # Pad the SE hidden dim up to >= 8 with zeros (exact no-op: padded hidden
    # units see zero weight + zero bias -> relu(0) = 0 -> zero rows of w2).
    Crp = max(_round_up(Cr, 8), 8)
    # Fold the 1/HW of the global average pool into w1 at trace time, and
    # pre-transpose both weights so the kernel does plain (Bt,K)@(K,N) dots.
    w1t = jnp.zeros((C, Crp), jnp.float32).at[:, :Cr].set(w1.T / HW)
    b1r = jnp.zeros((1, Crp), jnp.float32).at[0, :Cr].set(b1)
    w2t = jnp.zeros((Crp, C), jnp.float32).at[:Cr, :].set(w2.T)
    b2r = b2.reshape(1, C).astype(jnp.float32)

    vmem_cap, two_tc = _tpu_budget_info()
    # ~44-48 MiB budget on v7x (64 MiB physical), ~90 MiB on v5e/v6e (128 MiB).
    vmem_budget = int(0.7 * vmem_cap)
    # Bigger per-step traffic on the fastest-HBM chip to amortize the ~0.35us
    # per-grid-step overhead.
    target_bytes = (8 << 20) if two_tc else (4 << 20)

    per_batch_bytes = C * HW * 4
    Bt = _pick_batch_block(B, per_batch_bytes, vmem_budget, target_bytes, two_tc)
    grid = (B // Bt,)

    # Scoped-VMEM limit sized to the actual residency: 3 operands x 2 pipeline
    # buffers x block + weights + one block-sized elementwise temporary,
    # plus 20% headroom (clamped to physical VMEM).
    block_bytes = Bt * per_batch_bytes
    weight_bytes = (C * Crp + Crp + Crp * C + C) * 4
    residency = 3 * 2 * block_bytes + block_bytes + weight_bytes
    vmem_limit = int(min(0.85 * vmem_cap, max(1.2 * residency, 32 << 20)))

    # TODO(synk): if a single Bt=1 image block (7*C*HW*4 bytes of residency)
    # ever exceeds the v7x budget (e.g. C>=512 with 56x56 spatial), fall back
    # to a two-pass structure (pooled pass + blend pass); otherwise keep this
    # single-pass design (two-pass costs 5 HBM passes instead of 3).
    # TODO(synk): if DMA is still exposed on v7x after block sizing, sweep
    # pipeline_mode=pl.Buffered(3) on the x/y in_specs (adds one block/input).
    out = pl.pallas_call(
        _fusion_kernel,
        out_shape=jax.ShapeDtypeStruct((B, C, HW), x.dtype),
        grid_spec=pltpu.PrefetchScalarGridSpec(
            num_scalar_prefetch=0,
            grid=grid,
            in_specs=[
                pl.BlockSpec((Bt, C, HW), lambda b: (b, 0, 0)),
                pl.BlockSpec((Bt, C, HW), lambda b: (b, 0, 0)),
                pl.BlockSpec((C, Crp), lambda b: (0, 0)),
                pl.BlockSpec((1, Crp), lambda b: (0, 0)),
                pl.BlockSpec((Crp, C), lambda b: (0, 0)),
                pl.BlockSpec((1, C), lambda b: (0, 0)),
            ],
            out_specs=pl.BlockSpec((Bt, C, HW), lambda b: (b, 0, 0)),
        ),
        compiler_params=pltpu.CompilerParams(
            dimension_semantics=("parallel",),
            vmem_limit_bytes=vmem_limit),
    )(x2, y2, w1t, b1r, w2t, b2r)

    return out.reshape(B, C, H, W)


def _reference(x, y, w1, b1, w2, b2):
    # Pure-JAX reference mirroring the PyTorch forward.
    z = x + y
    pooled = jnp.mean(z, axis=(2, 3))                        # (B, C)
    h = jnp.maximum(pooled @ w1.T + b1, 0.0)                 # (B, Cr)
    s = jax.nn.sigmoid(h @ w2.T + b2)                        # (B, C)
    s = s[:, :, None, None]
    return x * s + y * (1.0 - s)


if __name__ == "__main__":
    # Small shapes: B=2, C=8 (r=4 -> hidden=2), H=W=16.
    B, C, H, W = 2, 8, 16, 16
    r = 4
    Cr = C // r

    key = jax.random.PRNGKey(0)
    k1, k2, k3, k4, k5, k6 = jax.random.split(key, 6)

    x = jax.random.normal(k1, (B, C, H, W), dtype=jnp.float32)
    y = jax.random.normal(k2, (B, C, H, W), dtype=jnp.float32)

    # 1x1 conv weights/biases (deterministic synthetic init).
    w1 = jax.random.normal(k3, (Cr, C), dtype=jnp.float32) * 0.1
    b1 = jax.random.normal(k4, (Cr,), dtype=jnp.float32) * 0.1
    w2 = jax.random.normal(k5, (C, Cr), dtype=jnp.float32) * 0.1
    b2 = jax.random.normal(k6, (C,), dtype=jnp.float32) * 0.1

    out = feature_fusion(x, y, w1, b1, w2, b2)
    jax.block_until_ready(out)

    # Note: 1/HW is folded into w1 (sum*(w/HW) vs mean*w) -- sub-ULP-per-op
    # difference, well inside the tolerance below.
    ref = _reference(x, y, w1, b1, w2, b2)
    assert out.shape == (B, C, H, W)
    assert jnp.allclose(out, ref, atol=1e-5, rtol=1e-5), "mismatch vs reference"

    print("KERNEL_OK")
</pallas_src>

<mosaic_0001>
module attributes {stable_mosaic.version = 11 : i64} {
  func.func @_fusion_kernel(%arg0: i32, %arg1: memref<2x8x256xf32, #tpu.memory_space<vmem>>, %arg2: memref<2x8x256xf32, #tpu.memory_space<vmem>>, %arg3: memref<8x8xf32, #tpu.memory_space<vmem>>, %arg4: memref<1x8xf32, #tpu.memory_space<vmem>>, %arg5: memref<8x8xf32, #tpu.memory_space<vmem>>, %arg6: memref<1x8xf32, #tpu.memory_space<vmem>>, %arg7: memref<2x8x256xf32, #tpu.memory_space<vmem>>) attributes {dimension_semantics = [#tpu.dimension_semantics<parallel>], iteration_bounds = array<i64: 1>, scalar_prefetch = 0 : i64, scratch_operands = 0 : i64, tpu.core_type = #tpu.core_type<tc>, window_params = [{transform_indices = @transform_0, window_bounds = array<i64: 2, 8, 256>}, {transform_indices = @transform_1, window_bounds = array<i64: 2, 8, 256>}, {pipeline_mode = #tpu.pipeline_mode<synchronous>, transform_indices = @transform_2, window_bounds = array<i64: 8, 8>}, {pipeline_mode = #tpu.pipeline_mode<synchronous>, transform_indices = @transform_3, window_bounds = array<i64: 1, 8>}, {pipeline_mode = #tpu.pipeline_mode<synchronous>, transform_indices = @transform_4, window_bounds = array<i64: 8, 8>}, {pipeline_mode = #tpu.pipeline_mode<synchronous>, transform_indices = @transform_5, window_bounds = array<i64: 1, 8>}, {transform_indices = @transform_6, window_bounds = array<i64: 2, 8, 256>}]} {
    %c0 = arith.constant 0 : index
    %c0_0 = arith.constant 0 : index
    %c0_1 = arith.constant 0 : index
    %0 = vector.load %arg1[%c0, %c0_0, %c0_1] : memref<2x8x256xf32, #tpu.memory_space<vmem>>, vector<2x8x256xf32>
    %c0_2 = arith.constant 0 : index
    %c0_3 = arith.constant 0 : index
    %c0_4 = arith.constant 0 : index
    %1 = vector.load %arg2[%c0_2, %c0_3, %c0_4] : memref<2x8x256xf32, #tpu.memory_space<vmem>>, vector<2x8x256xf32>
    %cst = arith.constant dense<0.000000e+00> : vector<2x8xf32>
    %2 = vector.multi_reduction <add>, %0, %cst [2] : vector<2x8x256xf32> to vector<2x8xf32>
    %cst_5 = arith.constant dense<0.000000e+00> : vector<2x8xf32>
    %3 = vector.multi_reduction <add>, %1, %cst_5 [2] : vector<2x8x256xf32> to vector<2x8xf32>
    %4 = arith.addf %2, %3 : vector<2x8xf32>
    %c0_6 = arith.constant 0 : index
    %c0_7 = arith.constant 0 : index
    %5 = vector.load %arg3[%c0_6, %c0_7] : memref<8x8xf32, #tpu.memory_space<vmem>>, vector<8x8xf32>
    %cst_8 = arith.constant dense<0.000000e+00> : vector<2x8xf32>
    %6 = tpu.matmul %4, %5, %cst_8 {dimension_numbers = #tpu.dot_dimension_numbers<[1], [0], [0], [1], [0, 0, 1, 1], [], []>} : vector<2x8xf32>, vector<8x8xf32>, vector<2x8xf32> -> vector<2x8xf32>
    %c0_9 = arith.constant 0 : index
    %c0_10 = arith.constant 0 : index
    %7 = vector.load %arg4[%c0_9, %c0_10] : memref<1x8xf32, #tpu.memory_space<vmem>>, vector<1x8xf32>
    %8 = vector.broadcast %7 : vector<1x8xf32> to vector<2x8xf32>
    %9 = arith.addf %6, %8 : vector<2x8xf32>
    %cst_11 = arith.constant 0.000000e+00 : f32
    %10 = vector.broadcast %cst_11 : f32 to vector<2x8xf32>
    %11 = arith.maximumf %9, %10 : vector<2x8xf32>
    %c0_12 = arith.constant 0 : index
    %c0_13 = arith.constant 0 : index
    %12 = vector.load %arg5[%c0_12, %c0_13] : memref<8x8xf32, #tpu.memory_space<vmem>>, vector<8x8xf32>
    %cst_14 = arith.constant dense<0.000000e+00> : vector<2x8xf32>
    %13 = tpu.matmul %11, %12, %cst_14 {dimension_numbers = #tpu.dot_dimension_numbers<[1], [0], [0], [1], [0, 0, 1, 1], [], []>} : vector<2x8xf32>, vector<8x8xf32>, vector<2x8xf32> -> vector<2x8xf32>
    %c0_15 = arith.constant 0 : index
    %c0_16 = arith.constant 0 : index
    %14 = vector.load %arg6[%c0_15, %c0_16] : memref<1x8xf32, #tpu.memory_space<vmem>>, vector<1x8xf32>
    %15 = vector.broadcast %14 : vector<1x8xf32> to vector<2x8xf32>
    %16 = arith.addf %13, %15 : vector<2x8xf32>
    %17 = arith.negf %16 : vector<2x8xf32>
    %18 = math.exp %17 : vector<2x8xf32>
    %cst_17 = arith.constant 1.000000e+00 : f32
    %19 = vector.broadcast %cst_17 : f32 to vector<2x8xf32>
    %20 = arith.addf %19, %18 : vector<2x8xf32>
    %21 = arith.divf %19, %20 : vector<2x8xf32>
    %22 = arith.subf %0, %1 : vector<2x8x256xf32>
    %23 = vector.shape_cast %21 : vector<2x8xf32> to vector<2x8x1xf32>
    %24 = vector.broadcast %23 : vector<2x8x1xf32> to vector<2x8x256xf32>
    %25 = arith.mulf %22, %24 : vector<2x8x256xf32>
    %26 = arith.addf %1, %25 : vector<2x8x256xf32>
    %c0_18 = arith.constant 0 : index
    %c0_19 = arith.constant 0 : index
    %c0_20 = arith.constant 0 : index
    %27 = vector.load %arg7[%c0_18, %c0_19, %c0_20] : memref<2x8x256xf32, #tpu.memory_space<vmem>>, vector<2x8x256xf32>
    tpu.vector_store %arg7[%c0_18, %c0_19, %c0_20], %26 {strides = array<i32>} : memref<2x8x256xf32, #tpu.memory_space<vmem>>, vector<2x8x256xf32>,
    return
  }
  func.func @transform_0(%arg0: i32) -> (i32, i32, i32) {
    %c0_i32 = arith.constant 0 : i32
    %c0_i32_0 = arith.constant 0 : i32
    %c0_i32_1 = arith.constant 0 : i32
    return %arg0, %c0_i32, %c0_i32_0 : i32, i32, i32
  }
  func.func @transform_1(%arg0: i32) -> (i32, i32, i32) {
    %c0_i32 = arith.constant 0 : i32
    %c0_i32_0 = arith.constant 0 : i32
    %c0_i32_1 = arith.constant 0 : i32
    return %arg0, %c0_i32, %c0_i32_0 : i32, i32, i32
  }
  func.func @transform_2(%arg0: i32) -> (i32, i32) {
    %c0_i32 = arith.constant 0 : i32
    %c0_i32_0 = arith.constant 0 : i32
    %c0_i32_1 = arith.constant 0 : i32
    return %c0_i32, %c0_i32_0 : i32, i32
  }
  func.func @transform_3(%arg0: i32) -> (i32, i32) {
    %c0_i32 = arith.constant 0 : i32
    %c0_i32_0 = arith.constant 0 : i32
    %c0_i32_1 = arith.constant 0 : i32
    return %c0_i32, %c0_i32_0 : i32, i32
  }
  func.func @transform_4(%arg0: i32) -> (i32, i32) {
    %c0_i32 = arith.constant 0 : i32
    %c0_i32_0 = arith.constant 0 : i32
    %c0_i32_1 = arith.constant 0 : i32
    return %c0_i32, %c0_i32_0 : i32, i32
  }
  func.func @transform_5(%arg0: i32) -> (i32, i32) {
    %c0_i32 = arith.constant 0 : i32
    %c0_i32_0 = arith.constant 0 : i32
    %c0_i32_1 = arith.constant 0 : i32
    return %c0_i32, %c0_i32_0 : i32, i32
  }
  func.func @transform_6(%arg0: i32) -> (i32, i32, i32) {
    %c0_i32 = arith.constant 0 : i32
    %c0_i32_0 = arith.constant 0 : i32
    %c0_i32_1 = arith.constant 0 : i32
    return %arg0, %c0_i32, %c0_i32_0 : i32, i32, i32
  }
}

</mosaic_0001>

<bundles_post_ra>
// kernel: tpu_custom_call.1
= control target key start
LH: loop header
LB: loop body
LE: loop exit
PB: predicated region body
PF: predicated region fallthrough
CT: control target
= control target key end

     0   :  { %11 = vsyncpa [#allocation3], 0  ;;  %s494_s0 = inlined_call_operand.hbm [shape: f32[2,8,256], index: 0, kind: input, shape index: {}]   ;;  %s495_s1 = inlined_call_operand.hbm [shape: f32[2,8,256], index: 1, kind: input, shape index: {}]   ;;  %s496_s2 = inlined_call_operand.hbm [shape: f32[8,8], index: 2, kind: input, shape index: {}]   ;;  %s497_s3 = inlined_call_operand.vmem [shape: f32[1,8], index: 3, kind: input, shape index: {}]   ;;  %s498_s4 = inlined_call_operand.hbm [shape: f32[8,8], index: 4, kind: input, shape index: {}]   ;;  %s499_s5 = inlined_call_operand.vmem [shape: f32[1,8], index: 5, kind: input, shape index: {}]   ;;  %s500_s6 = inlined_call_operand.hbm [shape: f32[2,8,256], index: 6, kind: output, shape index: {}]  }
   0x1   :  { %12 = vsyncpa [#allocation6], 0 }
   0x2   :  { %13 = vsyncpa [#allocation9], 0 }
   0x3   :  { %14 = vsyncpa [#allocation4], 0  ;;  %s32_s23 = sshll.u32 %s495_s1, 4  ;;  %s386_s24 = smov [#allocation5]   ;;  %s33_s23 = int_to_ptr.hbm [resolvable:$true] %s32_s23 }
   0x4   :  { %s34_s25 = sshll.u32 %s386_s24, 4  ;;  %s19_s28 = sshll.u32 %s494_s0, 4  ;;  %s35_s25 = int_to_ptr.vmem [resolvable:$true] %s34_s25  ;;  %s20_s28 = int_to_ptr.hbm [resolvable:$true] %s19_s28 }
   0x5   :  { %s387_s29 = smov 256   ;;  %s388_s30 = smov 16  }
   0x6   :  { %40 = dma.hbm_to_vmem [thread:$0]  %s33_s23, 512, %s35_s25, [#allocation6], %s387_s29, %s387_s29, %s388_s30  }
   0x7   :  { %s389_s7 = smov [#allocation2]   ;;  %s46_s1 = sshll.u32 %s496_s2, 4  ;;  %s47_s1 = int_to_ptr.hbm [resolvable:$true] %s46_s1 }
   0x8   :  { %s21_s8 = sshll.u32 %s389_s7, 4  ;;  %s59_s12 = sshll.u32 %s498_s4, 4  ;;  %s22_s8 = int_to_ptr.vmem [resolvable:$true] %s21_s8  ;;  %s60_s12 = int_to_ptr.hbm [resolvable:$true] %s59_s12 }
   0x9   :  { %27 = dma.hbm_to_vmem [thread:$0]  %s20_s28, 512, %s22_s8, [#allocation3], %s387_s29, %s387_s29, %s388_s30  }
   0xa   :  { %s390_s13 = smov [#allocation7]   ;;  %s391_s15 = smov [#allocation8]  }
   0xb   :  { %s48_s14 = sshll.u32 %s390_s13, 4  ;;  %s61_s16 = sshll.u32 %s391_s15, 4  ;;  %s49_s14 = int_to_ptr.vmem [resolvable:$true] %s48_s14  ;;  %s62_s16 = int_to_ptr.vmem [resolvable:$true] %s61_s16 }
   0xc   :  { %51 = dma.hbm_to_vmem [thread:$0]  %s47_s1, 128, %s49_s14, [#allocation6]  }
   0xd   :  { %64 = dma.hbm_to_vmem [thread:$0]  %s60_s12, 128, %s62_s16, [#allocation9]  }
   0xe   :  { %378 = dma.done.wait [#allocation3], 512  }
   0xf   :  { %379 = vsyncadd [#allocation3], 4294966784 }
  0x10   :  { %380 = dma.done.wait [#allocation6], 640  }
  0x11   :  { %381 = vsyncadd [#allocation6], 4294966656 }
  0x12   :  { %382 = dma.done.wait [#allocation9], 128  }
  0x13   :  { %383 = vsyncadd [#allocation9], 4294967168  ;;  %v446_v0 = vld [vmem:[#allocation5] sm:$0xff]  ;;  %v448_v1 = vld [vmem:[#allocation5 + $0x8] sm:$0xff]  ;;  %v112_v15 = vlaneseq  ;;  %vm116_vm0 = vcmask 1041409   ;;  %vm118_vm1 = vcmask 64512  }
  0x14   :  { %v450_v2 = vld [vmem:[#allocation2] sm:$0xff]  ;;  %v97_v3 = vadd.f32 %v448_v1, %v446_v0  ;;  %v454_v4 = vld [vmem:[#allocation2 + $0x8] sm:$0xff]  ;;  %v458_v6 = vld [vmem:[#allocation5 + $0x10] sm:$0xff]  ;;  %s225_s21 = sshll.u32 %s500_s6, 4  ;;  %s226_s21 = int_to_ptr.hbm [resolvable:$true] %s225_s21 }
  0x15   :  { %v91_v5 = vadd.f32 %v454_v4, %v450_v2  ;;  %v460_v7 = vld [vmem:[#allocation5 + $0x18] sm:$0xff]  ;;  %v462_v8 = vld [vmem:[#allocation2 + $0x10] sm:$0xff]  ;;  %v105_v12 = vld [vmem:[#allocation7] sm:$0xff]  ;;  %v113_v16 = vand.u32 127, %v112_v15  ;;  %v195_v29 = vshrl.u32 %v112_v15, 7  ;;  %v189_v48 = vsub.f32 %v450_v2, %v446_v0 }
  0x16   :  { %98 = vadd.xlane.f32.xlu1 %v97_v3  ;;  %v464_v9 = vld [vmem:[#allocation2 + $0x18] sm:$0xff]  ;;  %v100_v10 = vadd.f32 %v460_v7, %v458_v6  ;;  %136 = vmatpush.msra.mxu0 %v105_v12  ;;  %v142_v24 = vld [vmem:[#allocation8] sm:$0xff]  ;;  %v252_v25 = vld [vmem:[%s497_s3] ss:$0 sm:$0xff]  ;;  %v190_v49 = vsub.f32 %v454_v4, %v448_v1  ;;  %v191_v55 = vsub.f32 %v462_v8, %v458_v6  ;;  %s392_s3 = smov [#allocation10]  }
  0x17   :  { %92 = vadd.xlane.f32.xlu0 %v91_v5  ;;  %v94_v11 = vadd.f32 %v464_v9, %v462_v8  ;;  %165 = vmatpush.msra.mxu1 %v142_v24  ;;  %v253_v30 = vld [vmem:[%s499_s5] ss:$0 sm:$0xff]  ;;  %v192_v56 = vsub.f32 %v464_v9, %v460_v7  ;;  %s223_s5 = sshll.u32 %s392_s3, 4  ;;  %s224_s5 = int_to_ptr.vmem [resolvable:$true] %s223_s5 }
  0x18   :  { %250 = vset.pattern.permute.xlu2 %v195_v29  ;;  %251 = vset.pattern.permute.xlu0 %v195_v29 }
  0x1e   :  { %101 = vadd.xlane.f32.xlu1 %v100_v10 }
  0x1f   :  { %95 = vadd.xlane.f32.xlu0 %v94_v11 }
  0x89   :  { %v99_v13 = vpop.xlane.xlu1 %98 }
  0x8a   :  { %v93_v14 = vpop.xlane.xlu0 %92 }
  0x8b   :  { %v103_v17 = vadd.f32 %v99_v13, %v93_v14 }
  0x8d   :  { %v114_v21 = vperm.slane %v103_v17, %v113_v16 }
  0x91   :  { %v102_v18 = vpop.xlane.xlu1 %101 }
  0x92   :  { %v96_v19 = vpop.xlane.xlu0 %95 }
  0x93   :  { %v104_v20 = vadd.f32 %v102_v18, %v96_v19 }
  0x95   :  { %v115_v22 = vperm.slane %v104_v20, %v113_v16 }
  0x97   :  { %v117_v23 = vsel %vm116_vm0, %v115_v22, %v114_v21 }
  0x98   :  { %240 = vmatmul.msk.f32.vlgmr.msra.gmra.mxu0 %vm118_vm1, %v117_v23 }
 0x115   :  { %v138_v26 = vpop.f32.mrf.mxu0 }
 0x116   :  { %v139_v27 = vadd.f32 %v252_v25, %v138_v26 }
 0x118   :  { %v141_v28 = vmax.f32 %v139_v27, 0.0 }
 0x11a   :  { %241 = vmatmul.msk.f32.vlgmr.msra.gmra.mxu1 %vm118_vm1, %v141_v28 }
 0x197   :  { %v167_v31 = vpop.f32.mrf.mxu1 }
 0x198   :  { %v168_v32 = vadd.f32 %v253_v30, %v167_v31 }
 0x19a   :  { %v242_v33 = vmul.f32 -1.442695, %v168_v32 }
 0x19c   :  { %254 = vpow2.f32 %v242_v33 }
 0x1a2   :  { %v255_v34 = vpop.eup %254 }
 0x1a3   :  { %v173_v35 = vadd.f32 1.0, %v255_v34 }
 0x1a5   :  { %256 = vrcp.f32 %v173_v35  ;;  %v185_v39 = vand.u32 2147483648, %v173_v35  ;;  %v183_v41 = vand.u32 2147483647, %v173_v35  ;;  %vm179_vm3 = vweird.f32 %v173_v35 }
 0x1a7   :  { %v186_v43 = vor.u32 1.1754944e-38, %v185_v39  ;;  %vm184_vm5 = vcmp.eq.f32.partialorder %v183_v41, 8.507059e+37 }
 0x1ab   :  { %v257_v36 = vpop.eup %256 }
 0x1ac   :  { %v175_v37 = vmul.f32 %v257_v36, %v173_v35  ;;  %vm180_vm2 = vweird.f32 %v257_v36 }
 0x1ad   :  { %vm181_vm4 = vmor %vm179_vm3, %vm180_vm2 }
 0x1ae   :  { %v176_v38 = vsub.f32 1.0, %v175_v37 }
 0x1b0   :  { %v177_v40 = vmul.f32 %v257_v36, %v176_v38 }
 0x1b2   :  { %v178_v42 = vadd.f32 %v257_v36, %v177_v40 }
 0x1b4   :  { %v182_v44 = vsel %vm181_vm4, %v257_v36, %v178_v42 }
 0x1b5   :  { %v187_v45 = vsel %vm184_vm5, %v186_v43, %v182_v44 }
 0x1b6   :  { %v193_v46 = vperm.slane %v187_v45, 0  ;;  %v200_v47 = vperm.slane %v187_v45, 1 }
 0x1b8   :  { %198 = vperm.xlu2 %250, %v193_v46  }
 0x1c0   :  { %205 = vperm.xlu2 %250, %v200_v47  }
 0x212   :  { %v199_v50 = vpop.permute.xlu2 %198 }
 0x213   :  { %v207_v51 = vmul.f32 %v199_v50, %v189_v48  ;;  %v208_v52 = vmul.f32 %v199_v50, %v190_v49 }
 0x215   :  { %v211_v53 = vadd.f32 %v207_v51, %v446_v0  ;;  %v212_v54 = vadd.f32 %v208_v52, %v448_v1 }
 0x217   :  { %215 = vst [vmem:[#allocation10] sm:$0xff] %v211_v53 }
 0x218   :  { %216 = vst [vmem:[#allocation10 + $0x8] sm:$0xff] %v212_v54 }
 0x21a   :  { %v206_v57 = vpop.permute.xlu2 %205 }
 0x21b   :  { %v209_v58 = vmul.f32 %v206_v57, %v191_v55  ;;  %v210_v59 = vmul.f32 %v206_v57, %v192_v56 }
 0x21d   :  { %v213_v60 = vadd.f32 %v209_v58, %v458_v6  ;;  %v214_v61 = vadd.f32 %v210_v59, %v460_v7 }
 0x21f   :  { %217 = vst [vmem:[#allocation10 + $0x10] sm:$0xff] %v213_v60 }
 0x220   :  { %218 = vst [vmem:[#allocation10 + $0x18] sm:$0xff] %v214_v61 }
 0x221   :  { %231 = dma.vmem_to_hbm [thread:$0]  %s224_s5, 512, %s226_s21, [#allocation4], %s387_s29, %s387_s29, %s388_s30  }
 0x222   :  { %384 = dma.done.wait [#allocation4], 512  }
 0x223   :  { %385 = vsyncadd [#allocation4], 4294966784 }
 0x224   :  { %236 = vsyncpa [#allocation3], 1 }
 0x225   :  { %237 = vsyncpa [#allocation6], 1 }
 0x226   :  { %238 = vsyncpa [#allocation9], 1 }
 0x227   :  { %239 = vsyncpa [#allocation4], 1 }

</bundles_post_ra>
